<compile_context>
chip_gen: v7x
topology: tpu7x:2x2x1
jax: 0.10.0
libtpu: 0.0.40
codegen_flags: <defaults>
</compile_context>

<pallas_src>
import functools

import jax
import jax.numpy as jnp
import numpy as np
from jax.experimental import pallas as pl
from jax.experimental.pallas import tpu as pltpu


# ---------------------------------------------------------------------------
# Kernel: one batch element per grid step.
#   * bf16 operands / f32 accumulation for the big matmuls (weights arrive bf16).
#   * f32 operands for the LayerNorm statistics matmuls.
# ---------------------------------------------------------------------------
def _encoder_layer_kernel(
    qk_ref,      # (T, F0)          bf16
    v_ref,       # (T, N*F0)        bf16, heads packed into the lane dim
    a_ref,       # (F0, F0)         bf16, A = (wq / temperature) @ wk^T
    wv_ref,      # (N*F0, N*FH)     bf16, kron(I_N, wv)
    wfc_ref,     # (N*FH, N*F1)     bf16, kron(I_N, wfc)
    mavg_ref,    # (N*F1, N*F1)     f32,  kron(I_N, ones/F1) -> per-head mean
    gamma_ref,   # (1, N*F1)        f32,  tiled LayerNorm gamma
    beta_ref,    # (1, N*F1)        f32,  tiled LayerNorm beta
    w1_ref,      # (N*F1, N*2*F1)   bf16, kron(I_N, w1)
    w2_ref,      # (N*2*F1, N*F1)   bf16, kron(I_N, w2)
    out_ref,     # (T, N*F1)        f32, lane-dense output slab
    attn_ref,    # (T, 128)         f32, lane-dense attn slab (first T lanes valid)
    *,
    alpha: float,
    eps: float,
    lane_pad: int,
):
    f32 = jnp.float32
    bf16 = jnp.bfloat16

    def mm(a, b):  # a @ b with f32 accumulation (MXU)
        return jnp.dot(a, b, preferred_element_type=f32)

    def leaky(x):
        return jnp.where(x >= 0.0, x, alpha * x)

    # --- attention scores: (qk @ A) @ qk^T   (temperature folded into A) ---
    qk = qk_ref[...]                                  # (T, F0) bf16
    qa = mm(qk, a_ref[...]).astype(bf16)              # (T, F0)
    scores = jax.lax.dot_general(                     # (T, T) f32, no transpose
        qa, qk, dimension_numbers=(((1,), (1,)), ((), ())),
        preferred_element_type=f32)

    # TODO(synk): slf_attn_mask (masked_fill with -inf) not implemented; the
    # module is exercised with mask=None.

    # --- softmax (stats in f32, EUP reciprocal) ---
    m = jnp.max(scores, axis=-1, keepdims=True)
    e = jnp.exp(scores - m)
    s = jnp.sum(e, axis=-1, keepdims=True)
    attn = e * pl.reciprocal(s, approx=True)          # (T, T) f32

    # lane-dense (T, 128) store; wrapper slices [..., :T]
    if lane_pad > 0:
        attn_ref[...] = jnp.concatenate(
            [attn, jnp.zeros((attn.shape[0], lane_pad), f32)], axis=-1)
    else:
        attn_ref[...] = attn

    # --- all heads at once: V projection then attention mix (lane-dense) ---
    vproj = mm(v_ref[...], wv_ref[...])               # (T, N*FH) f32
    ao = mm(attn.astype(bf16), vproj.astype(bf16))    # (T, N*FH) f32

    # --- fc -> leaky_relu -> per-head LayerNorm (stats with f32 operands) ---
    fc = leaky(mm(ao.astype(bf16), wfc_ref[...]))     # (T, N*F1) f32
    mean = mm(fc, mavg_ref[...])                      # per-head mean, broadcast
    centered = fc - mean
    var = mm(centered * centered, mavg_ref[...])      # per-head biased variance
    inv_std = jax.lax.rsqrt(var + eps)                # EUP rsqrt
    ln = centered * inv_std * gamma_ref[...] + beta_ref[...]

    # --- position-wise feed-forward: leaky(w2(leaky(w1(x)))) ---
    h1 = leaky(mm(ln.astype(bf16), w1_ref[...]))      # (T, N*2*F1)
    h2 = leaky(mm(h1.astype(bf16), w2_ref[...]))      # (T, N*F1)

    out_ref[...] = h2                                 # lane-dense (last dim = 128)


# ---------------------------------------------------------------------------
# Wrapper: weight packing (head fusion / block-diagonalisation / bf16 cast /
# wq*wk^T fusion) happens here once, outside the kernel.
# ---------------------------------------------------------------------------
def encoder_layer(qk, v, params, *, f_hid, alpha=0.2, eps=1e-5):
    """qk: (B, T, F0), v: (B, N, T, F0) -> ((B, N, T, F1), (B, T, T))."""
    B, T, F0 = qk.shape
    _, N, _, _ = v.shape
    FH = f_hid
    F1 = params["wfc"].shape[1]
    temperature = float(np.power(FH, 0.5))
    LANE = 128
    assert T <= LANE

    f32, bf16 = jnp.float32, jnp.bfloat16
    eye = jnp.eye(N, dtype=f32)

    # ---- parameter packing (done once per call, in XLA, outside the kernel) ----
    a_mat = ((params["wq"] / temperature) @ params["wk"].T).astype(bf16)   # (F0, F0)
    wv_blk = jnp.kron(eye, params["wv"]).astype(bf16)                      # (N*F0, N*FH)
    wfc_blk = jnp.kron(eye, params["wfc"]).astype(bf16)                    # (N*FH, N*F1)
    mavg = jnp.kron(eye, jnp.full((F1, F1), 1.0 / F1, f32))                # f32 stats
    gamma_t = jnp.tile(params["gamma"].reshape(1, F1), (1, N)).astype(f32)
    beta_t = jnp.tile(params["beta"].reshape(1, F1), (1, N)).astype(f32)
    w1_blk = jnp.kron(eye, params["w1"]).astype(bf16)                      # (N*F1, N*2*F1)
    w2_blk = jnp.kron(eye, params["w2"]).astype(bf16)                      # (N*2*F1, N*F1)

    # Activations: cast to bf16 once here (no per-step casts of inputs in-kernel).
    qk_b = qk.astype(bf16)
    # v: (B, N, T, F0) -> (B, T, N*F0) so heads live in the lane dimension.
    v_r = jnp.transpose(v, (0, 2, 1, 3)).reshape(B, T, N * F0).astype(bf16)

    kernel = functools.partial(_encoder_layer_kernel, alpha=alpha, eps=eps,
                               lane_pad=LANE - T)

    def full(shape):
        return pl.BlockSpec(shape, lambda b: (0,) * len(shape))

    grid_spec = pltpu.PrefetchScalarGridSpec(
        num_scalar_prefetch=0,
        grid=(B,),
        in_specs=[
            pl.BlockSpec((None, T, F0), lambda b: (b, 0, 0)),       # qk
            pl.BlockSpec((None, T, N * F0), lambda b: (b, 0, 0)),   # v (packed)
            full((F0, F0)),                                         # A
            full((N * F0, N * FH)),                                 # wv_blk
            full((N * FH, N * F1)),                                 # wfc_blk
            full((N * F1, N * F1)),                                 # mavg
            full((1, N * F1)),                                      # gamma
            full((1, N * F1)),                                      # beta
            full((N * F1, N * 2 * F1)),                             # w1_blk
            full((N * 2 * F1, N * F1)),                             # w2_blk
        ],
        out_specs=[
            pl.BlockSpec((None, T, N * F1), lambda b: (b, 0, 0)),   # enc_output
            pl.BlockSpec((None, T, LANE), lambda b: (b, 0, 0)),     # attn (padded)
        ],
    )

    out_packed, attn_wide = pl.pallas_call(
        kernel,
        out_shape=(
            jax.ShapeDtypeStruct((B, T, N * F1), jnp.float32),
            jax.ShapeDtypeStruct((B, T, LANE), jnp.float32),
        ),
        grid_spec=grid_spec,
        compiler_params=pltpu.CompilerParams(
            dimension_semantics=("parallel",)   # B=2 -> both v7x TensorCores busy
        ),
    )(qk_b, v_r, a_mat, wv_blk, wfc_blk, mavg, gamma_t, beta_t, w1_blk, w2_blk)

    # (B, T, N*F1) -> (B, N, T, F1) and attn slab -> (B, T, T): free layout plumbing.
    out = out_packed.reshape(B, T, N, F1).transpose(0, 2, 1, 3)
    attn = attn_wide[..., :T]
    return out, attn


# ---------------------------------------------------------------------------
# Pure-JAX float32 reference (mirrors the PyTorch forward exactly).
# ---------------------------------------------------------------------------
def encoder_layer_ref(qk, v, params, *, f_hid, alpha=0.2, eps=1e-5):
    f32 = jnp.float32
    temperature = float(np.power(f_hid, 0.5))
    dot = lambda eq, a, b: jnp.einsum(eq, a.astype(f32), b.astype(f32),
                                      preferred_element_type=f32)
    leaky = lambda x: jnp.where(x >= 0, x, alpha * x)

    qp = dot("btf,fh->bth", qk, params["wq"])
    kp = dot("btf,fh->bth", qk, params["wk"])
    scores = dot("bth,bsh->bts", qp, kp) / temperature
    attn = jax.nn.softmax(scores, axis=-1)

    vp = dot("bntf,fh->bnth", v, params["wv"])
    ao = dot("bts,bnsh->bnth", attn, vp)

    fc = leaky(dot("bnth,hf->bntf", ao, params["wfc"]))
    mean = jnp.mean(fc, axis=-1, keepdims=True)
    centered = fc - mean
    var = jnp.mean(centered * centered, axis=-1, keepdims=True)
    ln = centered * jax.lax.rsqrt(var + eps) * params["gamma"][0] + params["beta"][0]

    h1 = leaky(dot("bntf,fh->bnth", ln, params["w1"]))
    h2 = leaky(dot("bnth,hf->bntf", h1, params["w2"]))
    return h2, attn


# ---------------------------------------------------------------------------
# Main
# ---------------------------------------------------------------------------
if __name__ == "__main__":
    # Small shapes consistent with the module's forward.
    B, N, T = 2, 4, 8          # batch, #views/heads of v, seq length
    F0, FH, F1 = 16, 32, 32    # input feat, hidden feat, output feat

    key = jax.random.PRNGKey(0)
    keys = jax.random.split(key, 8)

    # Deterministic parameter init (shapes match the PyTorch module; stored
    # transposed vs torch.nn.Linear so y = x @ W).
    params = {
        "wq": jax.random.normal(keys[0], (F0, FH), jnp.float32)
        * np.sqrt(2.0 / (F0 + FH)),
        "wk": jax.random.normal(keys[1], (F0, FH), jnp.float32)
        * np.sqrt(2.0 / (F0 + FH)),
        "wv": jax.random.normal(keys[2], (F0, FH), jnp.float32)
        * np.sqrt(2.0 / (F0 + FH)),
        "wfc": jax.random.normal(keys[3], (FH, F1), jnp.float32)
        * np.sqrt(2.0 / (FH + F1)),
        "gamma": jnp.ones((1, F1), jnp.float32),   # LayerNorm default init
        "beta": jnp.zeros((1, F1), jnp.float32),
        "w1": jax.random.normal(keys[4], (F1, 2 * F1), jnp.float32)
        * (1.414 * np.sqrt(2.0 / (F1 + 2 * F1))),
        "w2": jax.random.normal(keys[5], (2 * F1, F1), jnp.float32)
        * (1.414 * np.sqrt(2.0 / (2 * F1 + F1))),
    }

    enc_input_qk = jax.random.normal(keys[6], (B, T, F0), jnp.float32)
    enc_input_v = jax.random.normal(keys[7], (B, N, T, F0), jnp.float32)

    out, attn = encoder_layer(enc_input_qk, enc_input_v, params, f_hid=FH)
    out = jax.block_until_ready(out)
    attn = jax.block_until_ready(attn)

    # Check against the plain float32 module semantics.  Tolerances bound the
    # bf16-operand / f32-accumulation MXU numerics (plus the approximate EUP
    # reciprocal in the softmax), not structural differences.
    out_f, attn_f = encoder_layer_ref(enc_input_qk, enc_input_v, params, f_hid=FH)
    np.testing.assert_allclose(np.asarray(attn), np.asarray(attn_f),
                               rtol=2e-2, atol=2e-2)
    np.testing.assert_allclose(np.asarray(out), np.asarray(out_f),
                               rtol=1e-1, atol=1e-1)

    # Basic shape sanity.
    assert out.shape == (B, N, T, F1) and attn.shape == (B, T, T)

    print("KERNEL_OK")
</pallas_src>

<mosaic_0001>
module attributes {stable_mosaic.version = 11 : i64} {
  func.func @_encoder_layer_kernel(%arg0: i32, %arg1: memref<1x8x16xbf16, #tpu.memory_space<vmem>>, %arg2: memref<1x8x64xbf16, #tpu.memory_space<vmem>>, %arg3: memref<16x16xbf16, #tpu.memory_space<vmem>>, %arg4: memref<64x128xbf16, #tpu.memory_space<vmem>>, %arg5: memref<128x128xbf16, #tpu.memory_space<vmem>>, %arg6: memref<128x128xf32, #tpu.memory_space<vmem>>, %arg7: memref<1x128xf32, #tpu.memory_space<vmem>>, %arg8: memref<1x128xf32, #tpu.memory_space<vmem>>, %arg9: memref<128x256xbf16, #tpu.memory_space<vmem>>, %arg10: memref<256x128xbf16, #tpu.memory_space<vmem>>, %arg11: memref<1x8x128xf32, #tpu.memory_space<vmem>>, %arg12: memref<1x8x128xf32, #tpu.memory_space<vmem>>) attributes {dimension_semantics = [#tpu.dimension_semantics<parallel>], iteration_bounds = array<i64: 2>, scalar_prefetch = 0 : i64, scratch_operands = 0 : i64, tpu.core_type = #tpu.core_type<tc>, window_params = [{transform_indices = @transform_0, window_bounds = array<i64: 1, 8, 16>}, {transform_indices = @transform_1, window_bounds = array<i64: 1, 8, 64>}, {pipeline_mode = #tpu.pipeline_mode<synchronous>, transform_indices = @transform_2, window_bounds = array<i64: 16, 16>}, {pipeline_mode = #tpu.pipeline_mode<synchronous>, transform_indices = @transform_3, window_bounds = array<i64: 64, 128>}, {pipeline_mode = #tpu.pipeline_mode<synchronous>, transform_indices = @transform_4, window_bounds = array<i64: 128, 128>}, {pipeline_mode = #tpu.pipeline_mode<synchronous>, transform_indices = @transform_5, window_bounds = array<i64: 128, 128>}, {pipeline_mode = #tpu.pipeline_mode<synchronous>, transform_indices = @transform_6, window_bounds = array<i64: 1, 128>}, {pipeline_mode = #tpu.pipeline_mode<synchronous>, transform_indices = @transform_7, window_bounds = array<i64: 1, 128>}, {pipeline_mode = #tpu.pipeline_mode<synchronous>, transform_indices = @transform_8, window_bounds = array<i64: 128, 256>}, {pipeline_mode = #tpu.pipeline_mode<synchronous>, transform_indices = @transform_9, window_bounds = array<i64: 256, 128>}, {transform_indices = @transform_10, window_bounds = array<i64: 1, 8, 128>}, {transform_indices = @transform_11, window_bounds = array<i64: 1, 8, 128>}]} {
    %c0 = arith.constant 0 : index
    %c0_0 = arith.constant 0 : index
    %c0_1 = arith.constant 0 : index
    %0 = vector.load %arg1[%c0, %c0_0, %c0_1] : memref<1x8x16xbf16, #tpu.memory_space<vmem>>, vector<1x8x16xbf16>
    %1 = vector.shape_cast %0 : vector<1x8x16xbf16> to vector<8x16xbf16>
    %c0_2 = arith.constant 0 : index
    %c0_3 = arith.constant 0 : index
    %2 = vector.load %arg3[%c0_2, %c0_3] : memref<16x16xbf16, #tpu.memory_space<vmem>>, vector<16x16xbf16>
    %cst = arith.constant dense<0.000000e+00> : vector<8x16xf32>
    %3 = tpu.matmul %1, %2, %cst {dimension_numbers = #tpu.dot_dimension_numbers<[1], [0], [0], [1], [0, 0, 1, 1], [], []>} : vector<8x16xbf16>, vector<16x16xbf16>, vector<8x16xf32> -> vector<8x16xf32>
    %4 = arith.truncf %3 : vector<8x16xf32> to vector<8x16xbf16>
    %cst_4 = arith.constant dense<0.000000e+00> : vector<8x8xf32>
    %5 = tpu.matmul %4, %1, %cst_4 {dimension_numbers = #tpu.dot_dimension_numbers<[1], [1], [0], [0], [0, 0, 1, 0], [], []>} : vector<8x16xbf16>, vector<8x16xbf16>, vector<8x8xf32> -> vector<8x8xf32>
    %cst_5 = arith.constant dense<0xFF800000> : vector<8xf32>
    %6 = vector.multi_reduction <maximumf>, %5, %cst_5 [1] : vector<8x8xf32> to vector<8xf32>
    %7 = vector.shape_cast %6 : vector<8xf32> to vector<8x1xf32>
    %8 = vector.broadcast %7 : vector<8x1xf32> to vector<8x8xf32>
    %9 = arith.subf %5, %8 : vector<8x8xf32>
    %10 = math.exp %9 : vector<8x8xf32>
    %cst_6 = arith.constant dense<0.000000e+00> : vector<8xf32>
    %11 = vector.multi_reduction <add>, %10, %cst_6 [1] : vector<8x8xf32> to vector<8xf32>
    %12 = vector.shape_cast %11 : vector<8xf32> to vector<8x1xf32>
    %13 = tpu.reciprocal %12 {approx = true} : vector<8x1xf32> -> vector<8x1xf32>
    %14 = vector.broadcast %13 : vector<8x1xf32> to vector<8x8xf32>
    %15 = arith.mulf %10, %14 : vector<8x8xf32>
    %cst_7 = arith.constant 0.000000e+00 : f32
    %16 = vector.broadcast %cst_7 : f32 to vector<8x120xf32>
    %17 = tpu.concatenate %15, %16 in 1 : vector<8x8xf32>, vector<8x120xf32> -> vector<8x128xf32>
    %c0_8 = arith.constant 0 : index
    %c0_9 = arith.constant 0 : index
    %c0_10 = arith.constant 0 : index
    %18 = vector.load %arg12[%c0_8, %c0_9, %c0_10] : memref<1x8x128xf32, #tpu.memory_space<vmem>>, vector<1x8x128xf32>
    %19 = vector.shape_cast %18 : vector<1x8x128xf32> to vector<8x128xf32>
    %20 = vector.shape_cast %17 : vector<8x128xf32> to vector<1x8x128xf32>
    tpu.vector_store %arg12[%c0_8, %c0_9, %c0_10], %20 {strides = array<i32>} : memref<1x8x128xf32, #tpu.memory_space<vmem>>, vector<1x8x128xf32>,
    %c0_11 = arith.constant 0 : index
    %c0_12 = arith.constant 0 : index
    %c0_13 = arith.constant 0 : index
    %21 = vector.load %arg2[%c0_11, %c0_12, %c0_13] : memref<1x8x64xbf16, #tpu.memory_space<vmem>>, vector<1x8x64xbf16>
    %22 = vector.shape_cast %21 : vector<1x8x64xbf16> to vector<8x64xbf16>
    %c0_14 = arith.constant 0 : index
    %c0_15 = arith.constant 0 : index
    %23 = vector.load %arg4[%c0_14, %c0_15] : memref<64x128xbf16, #tpu.memory_space<vmem>>, vector<64x128xbf16>
    %cst_16 = arith.constant dense<0.000000e+00> : vector<8x128xf32>
    %24 = tpu.matmul %22, %23, %cst_16 {dimension_numbers = #tpu.dot_dimension_numbers<[1], [0], [0], [1], [0, 0, 1, 1], [], []>} : vector<8x64xbf16>, vector<64x128xbf16>, vector<8x128xf32> -> vector<8x128xf32>
    %25 = arith.truncf %15 : vector<8x8xf32> to vector<8x8xbf16>
    %26 = arith.truncf %24 : vector<8x128xf32> to vector<8x128xbf16>
    %cst_17 = arith.constant dense<0.000000e+00> : vector<8x128xf32>
    %27 = tpu.matmul %25, %26, %cst_17 {dimension_numbers = #tpu.dot_dimension_numbers<[1], [0], [0], [1], [0, 0, 1, 1], [], []>} : vector<8x8xbf16>, vector<8x128xbf16>, vector<8x128xf32> -> vector<8x128xf32>
    %28 = arith.truncf %27 : vector<8x128xf32> to vector<8x128xbf16>
    %c0_18 = arith.constant 0 : index
    %c0_19 = arith.constant 0 : index
    %29 = vector.load %arg5[%c0_18, %c0_19] : memref<128x128xbf16, #tpu.memory_space<vmem>>, vector<128x128xbf16>
    %cst_20 = arith.constant dense<0.000000e+00> : vector<8x128xf32>
    %30 = tpu.matmul %28, %29, %cst_20 {dimension_numbers = #tpu.dot_dimension_numbers<[1], [0], [0], [1], [0, 0, 1, 1], [], []>} : vector<8x128xbf16>, vector<128x128xbf16>, vector<8x128xf32> -> vector<8x128xf32>
    %cst_21 = arith.constant 0.000000e+00 : f32
    %31 = vector.broadcast %cst_21 : f32 to vector<8x128xf32>
    %32 = arith.cmpf oge, %30, %31 : vector<8x128xf32>
    %cst_22 = arith.constant 2.000000e-01 : f32
    %33 = vector.broadcast %cst_22 : f32 to vector<8x128xf32>
    %34 = arith.mulf %33, %30 : vector<8x128xf32>
    %35 = arith.select %32, %30, %34 : vector<8x128xi1>, vector<8x128xf32>
    %c0_23 = arith.constant 0 : index
    %c0_24 = arith.constant 0 : index
    %36 = vector.load %arg6[%c0_23, %c0_24] : memref<128x128xf32, #tpu.memory_space<vmem>>, vector<128x128xf32>
    %cst_25 = arith.constant dense<0.000000e+00> : vector<8x128xf32>
    %37 = tpu.matmul %35, %36, %cst_25 {dimension_numbers = #tpu.dot_dimension_numbers<[1], [0], [0], [1], [0, 0, 1, 1], [], []>} : vector<8x128xf32>, vector<128x128xf32>, vector<8x128xf32> -> vector<8x128xf32>
    %38 = arith.subf %35, %37 : vector<8x128xf32>
    %39 = arith.mulf %38, %38 : vector<8x128xf32>
    %c0_26 = arith.constant 0 : index
    %c0_27 = arith.constant 0 : index
    %40 = vector.load %arg6[%c0_26, %c0_27] : memref<128x128xf32, #tpu.memory_space<vmem>>, vector<128x128xf32>
    %cst_28 = arith.constant dense<0.000000e+00> : vector<8x128xf32>
    %41 = tpu.matmul %39, %40, %cst_28 {dimension_numbers = #tpu.dot_dimension_numbers<[1], [0], [0], [1], [0, 0, 1, 1], [], []>} : vector<8x128xf32>, vector<128x128xf32>, vector<8x128xf32> -> vector<8x128xf32>
    %cst_29 = arith.constant 9.99999974E-6 : f32
    %42 = vector.broadcast %cst_29 : f32 to vector<8x128xf32>
    %43 = arith.addf %41, %42 : vector<8x128xf32>
    %44 = math.rsqrt %43 : vector<8x128xf32>
    %45 = arith.mulf %38, %44 : vector<8x128xf32>
    %c0_30 = arith.constant 0 : index
    %c0_31 = arith.constant 0 : index
    %46 = vector.load %arg7[%c0_30, %c0_31] : memref<1x128xf32, #tpu.memory_space<vmem>>, vector<1x128xf32>
    %47 = vector.broadcast %46 : vector<1x128xf32> to vector<8x128xf32>
    %48 = arith.mulf %45, %47 : vector<8x128xf32>
    %c0_32 = arith.constant 0 : index
    %c0_33 = arith.constant 0 : index
    %49 = vector.load %arg8[%c0_32, %c0_33] : memref<1x128xf32, #tpu.memory_space<vmem>>, vector<1x128xf32>
    %50 = vector.broadcast %49 : vector<1x128xf32> to vector<8x128xf32>
    %51 = arith.addf %48, %50 : vector<8x128xf32>
    %52 = arith.truncf %51 : vector<8x128xf32> to vector<8x128xbf16>
    %c0_34 = arith.constant 0 : index
    %c0_35 = arith.constant 0 : index
    %53 = vector.load %arg9[%c0_34, %c0_35] : memref<128x256xbf16, #tpu.memory_space<vmem>>, vector<128x256xbf16>
    %cst_36 = arith.constant dense<0.000000e+00> : vector<8x256xf32>
    %54 = tpu.matmul %52, %53, %cst_36 {dimension_numbers = #tpu.dot_dimension_numbers<[1], [0], [0], [1], [0, 0, 1, 1], [], []>} : vector<8x128xbf16>, vector<128x256xbf16>, vector<8x256xf32> -> vector<8x256xf32>
    %cst_37 = arith.constant 0.000000e+00 : f32
    %55 = vector.broadcast %cst_37 : f32 to vector<8x256xf32>
    %56 = arith.cmpf oge, %54, %55 : vector<8x256xf32>
    %cst_38 = arith.constant 2.000000e-01 : f32
    %57 = vector.broadcast %cst_38 : f32 to vector<8x256xf32>
    %58 = arith.mulf %57, %54 : vector<8x256xf32>
    %59 = arith.select %56, %54, %58 : vector<8x256xi1>, vector<8x256xf32>
    %60 = arith.truncf %59 : vector<8x256xf32> to vector<8x256xbf16>
    %c0_39 = arith.constant 0 : index
    %c0_40 = arith.constant 0 : index
    %61 = vector.load %arg10[%c0_39, %c0_40] : memref<256x128xbf16, #tpu.memory_space<vmem>>, vector<256x128xbf16>
    %cst_41 = arith.constant dense<0.000000e+00> : vector<8x128xf32>
    %62 = tpu.matmul %60, %61, %cst_41 {dimension_numbers = #tpu.dot_dimension_numbers<[1], [0], [0], [1], [0, 0, 1, 1], [], []>} : vector<8x256xbf16>, vector<256x128xbf16>, vector<8x128xf32> -> vector<8x128xf32>
    %cst_42 = arith.constant 0.000000e+00 : f32
    %63 = vector.broadcast %cst_42 : f32 to vector<8x128xf32>
    %64 = arith.cmpf oge, %62, %63 : vector<8x128xf32>
    %cst_43 = arith.constant 2.000000e-01 : f32
    %65 = vector.broadcast %cst_43 : f32 to vector<8x128xf32>
    %66 = arith.mulf %65, %62 : vector<8x128xf32>
    %67 = arith.select %64, %62, %66 : vector<8x128xi1>, vector<8x128xf32>
    %c0_44 = arith.constant 0 : index
    %c0_45 = arith.constant 0 : index
    %c0_46 = arith.constant 0 : index
    %68 = vector.load %arg11[%c0_44, %c0_45, %c0_46] : memref<1x8x128xf32, #tpu.memory_space<vmem>>, vector<1x8x128xf32>
    %69 = vector.shape_cast %68 : vector<1x8x128xf32> to vector<8x128xf32>
    %70 = vector.shape_cast %67 : vector<8x128xf32> to vector<1x8x128xf32>
    tpu.vector_store %arg11[%c0_44, %c0_45, %c0_46], %70 {strides = array<i32>} : memref<1x8x128xf32, #tpu.memory_space<vmem>>, vector<1x8x128xf32>,
    return
  }
  func.func @transform_0(%arg0: i32) -> (i32, i32, i32) {
    %c0_i32 = arith.constant 0 : i32
    %c0_i32_0 = arith.constant 0 : i32
    %c0_i32_1 = arith.constant 0 : i32
    return %arg0, %c0_i32, %c0_i32_0 : i32, i32, i32
  }
  func.func @transform_1(%arg0: i32) -> (i32, i32, i32) {
    %c0_i32 = arith.constant 0 : i32
    %c0_i32_0 = arith.constant 0 : i32
    %c0_i32_1 = arith.constant 0 : i32
    return %arg0, %c0_i32, %c0_i32_0 : i32, i32, i32
  }
  func.func @transform_2(%arg0: i32) -> (i32, i32) {
    %c0_i32 = arith.constant 0 : i32
    %c0_i32_0 = arith.constant 0 : i32
    %c0_i32_1 = arith.constant 0 : i32
    return %c0_i32, %c0_i32_0 : i32, i32
  }
  func.func @transform_3(%arg0: i32) -> (i32, i32) {
    %c0_i32 = arith.constant 0 : i32
    %c0_i32_0 = arith.constant 0 : i32
    %c0_i32_1 = arith.constant 0 : i32
    return %c0_i32, %c0_i32_0 : i32, i32
  }
  func.func @transform_4(%arg0: i32) -> (i32, i32) {
    %c0_i32 = arith.constant 0 : i32
    %c0_i32_0 = arith.constant 0 : i32
    %c0_i32_1 = arith.constant 0 : i32
    return %c0_i32, %c0_i32_0 : i32, i32
  }
  func.func @transform_5(%arg0: i32) -> (i32, i32) {
    %c0_i32 = arith.constant 0 : i32
    %c0_i32_0 = arith.constant 0 : i32
    %c0_i32_1 = arith.constant 0 : i32
    return %c0_i32, %c0_i32_0 : i32, i32
  }
  func.func @transform_6(%arg0: i32) -> (i32, i32) {
    %c0_i32 = arith.constant 0 : i32
    %c0_i32_0 = arith.constant 0 : i32
    %c0_i32_1 = arith.constant 0 : i32
    return %c0_i32, %c0_i32_0 : i32, i32
  }
  func.func @transform_7(%arg0: i32) -> (i32, i32) {
    %c0_i32 = arith.constant 0 : i32
    %c0_i32_0 = arith.constant 0 : i32
    %c0_i32_1 = arith.constant 0 : i32
    return %c0_i32, %c0_i32_0 : i32, i32
  }
  func.func @transform_8(%arg0: i32) -> (i32, i32) {
    %c0_i32 = arith.constant 0 : i32
    %c0_i32_0 = arith.constant 0 : i32
    %c0_i32_1 = arith.constant 0 : i32
    return %c0_i32, %c0_i32_0 : i32, i32
  }
  func.func @transform_9(%arg0: i32) -> (i32, i32) {
    %c0_i32 = arith.constant 0 : i32
    %c0_i32_0 = arith.constant 0 : i32
    %c0_i32_1 = arith.constant 0 : i32
    return %c0_i32, %c0_i32_0 : i32, i32
  }
  func.func @transform_10(%arg0: i32) -> (i32, i32, i32) {
    %c0_i32 = arith.constant 0 : i32
    %c0_i32_0 = arith.constant 0 : i32
    %c0_i32_1 = arith.constant 0 : i32
    return %arg0, %c0_i32, %c0_i32_0 : i32, i32, i32
  }
  func.func @transform_11(%arg0: i32) -> (i32, i32, i32) {
    %c0_i32 = arith.constant 0 : i32
    %c0_i32_0 = arith.constant 0 : i32
    %c0_i32_1 = arith.constant 0 : i32
    return %arg0, %c0_i32, %c0_i32_0 : i32, i32, i32
  }
}

</mosaic_0001>

<bundles_post_ra>
// kernel: tpu_custom_call.1
= control target key start
LH: loop header
LB: loop body
LE: loop exit
PB: predicated region body
PF: predicated region fallthrough
CT: control target
= control target key end

     0   :  { %s2982_s0 = inlined_call_operand.hbm [shape: bf16[2,8,16], index: 0, kind: input, shape index: {}]   ;;  %s2983_s1 = inlined_call_operand.hbm [shape: bf16[2,8,64], index: 1, kind: input, shape index: {}]   ;;  %s2984_s2 = inlined_call_operand.hbm [shape: bf16[16,16], index: 2, kind: input, shape index: {}]   ;;  %s2985_s3 = inlined_call_operand.hbm [shape: bf16[64,128], index: 3, kind: input, shape index: {}]   ;;  %s2986_s4 = inlined_call_operand.hbm [shape: bf16[128,128], index: 4, kind: input, shape index: {}]   ;;  %s2987_s5 = inlined_call_operand.hbm [shape: f32[128,128], index: 5, kind: input, shape index: {}]   ;;  %s2988_s6 = inlined_call_operand.vmem [shape: f32[1,128], index: 6, kind: input, shape index: {}]   ;;  %s2989_s7 = inlined_call_operand.vmem [shape: f32[1,128], index: 7, kind: input, shape index: {}]   ;;  %s2990_s8 = inlined_call_operand.hbm [shape: bf16[128,256], index: 8, kind: input, shape index: {}]   ;;  %s2991_s9 = inlined_call_operand.hbm [shape: bf16[256,128], index: 9, kind: input, shape index: {}]   ;;  %s2992_s10 = inlined_call_operand.hbm [shape: f32[2,8,128], index: 10, kind: output, shape index: {0}]   ;;  %s2993_s11 = inlined_call_operand.hbm [shape: f32[2,8,128], index: 11, kind: output, shape index: {1}]  }
   0x1   :  { %3004 = sst [smem:[#allocation27_spill]] %s2984_s2 }
   0x2   :  { %3005 = sst [smem:[#allocation28_spill]] %s2985_s3 }
   0x3   :  { %3006 = sst [smem:[#allocation29_spill]] %s2986_s4 }
   0x4   :  { %3007 = sst [smem:[#allocation30_spill]] %s2987_s5 }
   0x5   :  { %3008 = sst [smem:[#allocation31_spill]] %s2989_s7 }
   0x6   :  { %3009 = sst [smem:[#allocation32_spill]] %s2990_s8 }
   0x7   :  { %3010 = sst [smem:[#allocation33_spill]] %s2992_s10 }
   0x8   :  { %3011 = sst [smem:[#allocation34_spill]] %s2993_s11 }
   0x9   :  { %17 = vsyncpa [#allocation3], 0 }
   0xa   :  { %19 = vsyncpa [#allocation3 + $0x1], 0 }
   0xb   :  { %20 = vsyncpa [#allocation6], 0 }
   0xc   :  { %22 = vsyncpa [#allocation6 + $0x1], 0 }
   0xd   :  { %23 = vsyncpa [#allocation9], 0 }
   0xe   :  { %24 = vsyncpa [#allocation12], 0 }
   0xf   :  { %25 = vsyncpa [#allocation15], 0 }
  0x10   :  { %26 = vsyncpa [#allocation4], 0 }
  0x11   :  { %28 = vsyncpa [#allocation4 + $0x1], 0 }
  0x12   :  { %29 = vsyncpa [#allocation18], 0 }
  0x13   :  { %31 = vsyncpa [#allocation18 + $0x1], 0  ;;  %s2526_s17 = smov 0   ;;  %s2528_s18 = smov 0  }
  0x14   :  { %s2530_s19 = smov 0   ;;  %s2532_s20 = smov 0  }
  0x15 LB: > { %s2448_s21 = smov [#allocation7]   ;;  %s2547_s23 = sadd.s32 4294967295, %s2446_s20   ;;  %s2446_s20 = sphi %s2532_s20, %s3047_s20   ;;  %s2442_s19 = sphi %s2530_s19, %s3046_s19   ;;  %s2438_s18 = sphi %s2528_s18, %s3045_s18   ;;  %s2434_s17 = sphi %s2526_s17, %s3044_s17  }
  0x16   : > { %s326_s22 = sshll.u32 %s2448_s21, 4  ;;  %p1592_p0 = scmp.ge.s32.totalorder %s2446_s20, 1  ;;  %s2552_s22 = int_to_ptr.vmem [resolvable:$true] %s326_s22 }
  0x17   : > { %p3000_p1 = scmp.eq.s32.totalorder %s2547_s23, 0  ;;  %p314_p2 = scmp.lt.s32.totalorder %s2446_s20, 3 }
  0x18   : > { %s2449_s25 = smov [#allocation8]   ;;  %s2450_s28 = smov [#allocation11]  }
  0x19   : > { %p2554_p3 = pnand %p1592_p0, %p314_p2  ;;  %s339_s26 = sshll.u32 %s2449_s25, 4  ;;  %s2567_s26 = int_to_ptr.vmem [resolvable:$true] %s339_s26 }
  0x1a   : > { %s365_s29 = sshll.u32 %s2450_s28, 4  ;;  %s3014_s2 = sld [smem:[#allocation27_spill]]  ;;  %s2569_s29 = int_to_ptr.vmem [resolvable:$true] %s365_s29 }
  0x1b   : > { %s3012_s24 = scalar_select %p2554_p3, 1, 0 }
  0x1c   : > { %p1948_p5 = pneg %p2554_p3 }
  0x1e   : > { %p2563_p6 = pnand %p1948_p5, %p3000_p1 }
  0x20   : > { %s2100_s13 = scalar_lea.hbm %s3014_s2, 128  ;;  %p2579_p8 = pneg %p2563_p6 }
  0x21   : > { %p2101_p7 = scmp.ne.s32.totalorder %s3014_s2, %s2100_s13  ;;  %p2107_p11 = scmp.lt.u32.totalorder %s2100_s13, %s3014_s2 }
  0x23   : > { %p2103_p9 = pnand %p2579_p8, %p2101_p7 }
  0x25   : > { %p2104_p10 = pneg %p2103_p9 }
  0x27   : > { %p2109_p12 = pnand %p2107_p11, %p2104_p10 }
  0x29   : > { %2112 = shalt.err (!%p2109_p12)
}
  0x2a   : > { %s2113_s28 = scalar_lea.vmem %s2552_s22, 128  ;;  %p2121_p5 = scmp.lt.s32.totalorder %s2552_s22, %s2552_s22 }
  0x2b   : > { %p2114_p13 = scmp.ne.s32.totalorder %s2552_s22, %s2113_s28  ;;  %p2122_p4 = scmp.lt.s32.totalorder %s2113_s28, %s2113_s28 }
  0x2d   : > { %p2116_p0 = pnand %p2114_p13, %p2579_p8  ;;  %p2123_p7 = por %p2122_p4, %p2121_p5 }
  0x2f   : > { %p2117_p2 = pneg %p2116_p0 }
  0x31   : > { %p2124_p9 = pnand %p2123_p7, %p2117_p2 }
  0x33   : > { %2127 = shalt.err (!%p2124_p9)
}
  0x34   : > { %s2996_s30 = smov 64   ;;  %s2998_s12 = smov 4  }
  0x35   : > { %1951 = dma.hbm_to_vmem [thread:$0]  (!%p2563_p6), %s3014_s2, 128, %s2552_s22, [#allocation6], %s2996_s30, %s2996_s30, %s2998_s12  }
  0x36   : > { %s3016_s3 = sld [smem:[#allocation28_spill]] }
  0x3c   : > { %s2128_s25 = scalar_lea.hbm %s3016_s3, 512 }
  0x3d   : > { %p2129_p4 = scmp.ne.s32.totalorder %s3016_s3, %s2128_s25  ;;  %p2135_p12 = scmp.lt.u32.totalorder %s2128_s25, %s3016_s3 }
  0x3f   : > { %p2131_p10 = pnand %p2129_p4, %p2579_p8 }
  0x41   : > { %p2132_p11 = pneg %p2131_p10 }
  0x43   : > { %p2137_p13 = pnand %p2135_p12, %p2132_p11 }
  0x45   : > { %2140 = shalt.err (!%p2137_p13)
}
  0x46   : > { %s2141_s22 = scalar_lea.vmem %s2567_s26, 512  ;;  %p2149_p7 = scmp.lt.s32.totalorder %s2567_s26, %s2567_s26 }
  0x47   : > { %p2142_p0 = scmp.ne.s32.totalorder %s2567_s26, %s2141_s22  ;;  %p2150_p9 = scmp.lt.s32.totalorder %s2141_s22, %s2141_s22 }
  0x49   : > { %p2144_p2 = pnand %p2142_p0, %p2579_p8  ;;  %p2151_p4 = por %p2150_p9, %p2149_p7 }
  0x4b   : > { %p2145_p5 = pneg %p2144_p2 }
  0x4d   : > { %p2152_p10 = pnand %p2151_p4, %p2145_p5 }
  0x4f   : > { %2155 = shalt.err (!%p2152_p10)
}
  0x50   : > { %1954 = dma.hbm_to_vmem [thread:$0]  (!%p2563_p6), %s3016_s3, 512, %s2567_s26, [#allocation9], %s2996_s30, %s2996_s30, %s2998_s12  }
  0x51   : > { %s3017_s5 = sld [smem:[#allocation30_spill]] }
  0x57   : > { %s2156_s14 = scalar_lea.hbm %s3017_s5, 2048 }
  0x58   : > { %p2157_p11 = scmp.ne.s32.totalorder %s3017_s5, %s2156_s14  ;;  %p2163_p0 = scmp.lt.u32.totalorder %s2156_s14, %s3017_s5 }
  0x5a   : > { %p2159_p12 = pnand %p2157_p11, %p2579_p8 }
  0x5c   : > { %p2160_p13 = pneg %p2159_p12 }
  0x5e   : > { %p2165_p2 = pnand %p2163_p0, %p2160_p13 }
  0x60   : > { %2168 = shalt.err (!%p2165_p2)
}
  0x61   : > { %s2169_s26 = scalar_lea.vmem %s2569_s29, 2048  ;;  %p2177_p4 = scmp.lt.s32.totalorder %s2569_s29, %s2569_s29 }
  0x62   : > { %p2170_p5 = scmp.ne.s32.totalorder %s2569_s29, %s2169_s26  ;;  %p2178_p10 = scmp.lt.s32.totalorder %s2169_s26, %s2169_s26 }
  0x64   : > { %p2172_p7 = pnand %p2170_p5, %p2579_p8  ;;  %p2179_p11 = por %p2178_p10, %p2177_p4 }
  0x66   : > { %p2173_p9 = pneg %p2172_p7 }
  0x68   : > { %p2180_p12 = pnand %p2179_p11, %p2173_p9 }
  0x6a   : > { %2183 = shalt.err (!%p2180_p12)
}
  0x6b   : > { %s2453_s22 = smov 128   ;;  %s2454_s7 = smov 8  }
  0x6c   : > { %1960 = dma.hbm_to_vmem [thread:$0]  (!%p2563_p6), %s3017_s5, 2048, %s2569_s29, [#allocation12], %s2453_s22, %s2453_s22, %s2454_s7  }
  0x6d   : > { %s2455_s13 = smov [#allocation10]   ;;  %s2456_s15 = smov [#allocation13]  }
  0x6e   : > { %s352_s14 = sshll.u32 %s2455_s13, 4  ;;  %s384_s21 = sshll.u32 %s2456_s15, 4  ;;  %s353_s14 = int_to_ptr.vmem [resolvable:$true] %s352_s14  ;;  %s385_s21 = int_to_ptr.vmem [resolvable:$true] %s384_s21 }
  0x6f   : > { %s3018_s4 = sld [smem:[#allocation29_spill]] }
  0x75   : > { %s2184_s26 = scalar_lea.hbm %s3018_s4, 1024 }
  0x76   : > { %p2185_p13 = scmp.ne.s32.totalorder %s3018_s4, %s2184_s26  ;;  %p2191_p5 = scmp.lt.u32.totalorder %s2184_s26, %s3018_s4 }
  0x78   : > { %p2187_p0 = pnand %p2185_p13, %p2579_p8 }
  0x7a   : > { %p2188_p2 = pneg %p2187_p0 }
  0x7c   : > { %p2193_p7 = pnand %p2191_p5, %p2188_p2 }
  0x7e   : > { %2196 = shalt.err (!%p2193_p7)
}
  0x7f   : > { %s2197_s29 = scalar_lea.vmem %s353_s14, 1024  ;;  %p2205_p11 = scmp.lt.s32.totalorder %s353_s14, %s353_s14 }
  0x80   : > { %p2198_p9 = scmp.ne.s32.totalorder %s353_s14, %s2197_s29  ;;  %p2206_p12 = scmp.lt.s32.totalorder %s2197_s29, %s2197_s29 }
  0x82   : > { %p2200_p4 = pnand %p2198_p9, %p2579_p8  ;;  %p2207_p1 = por %p2206_p12, %p2205_p11 }
  0x84   : > { %p2201_p10 = pneg %p2200_p4 }
  0x86   : > { %p2208_p3 = pnand %p2207_p1, %p2201_p10 }
  0x88   : > { %2211 = shalt.err (!%p2208_p3)
}
  0x89   : > { %s3019_s30 = smov 4   ;;  %s3020_s12 = smov 64  }
  0x8a   : > { %1957 = dma.hbm_to_vmem [thread:$0]  (!%p2563_p6), %s3018_s4, 1024, %s353_s14, [#allocation9], %s3020_s12, %s3020_s12, %s3019_s30  }
  0x8b   : > { %s3021_s8 = sld [smem:[#allocation32_spill]] }
  0x91   : > { %s2212_s13 = scalar_lea.hbm %s3021_s8, 2048 }
  0x92   : > { %p2213_p1 = scmp.ne.s32.totalorder %s3021_s8, %s2212_s13  ;;  %p2219_p0 = scmp.lt.u32.totalorder %s2212_s13, %s3021_s8 }
  0x94   : > { %p2215_p3 = pnand %p2213_p1, %p2579_p8 }
  0x96   : > { %p2216_p13 = pneg %p2215_p3 }
  0x98   : > { %p2221_p2 = pnand %p2219_p0, %p2216_p13 }
  0x9a   : > { %2224 = shalt.err (!%p2221_p2)
}
  0x9b   : > { %s2225_s29 = scalar_lea.vmem %s385_s21, 2048  ;;  %p2233_p4 = scmp.lt.s32.totalorder %s385_s21, %s385_s21 }
  0x9c   : > { %p2226_p5 = scmp.ne.s32.totalorder %s385_s21, %s2225_s29  ;;  %p2234_p10 = scmp.lt.s32.totalorder %s2225_s29, %s2225_s29 }
  0x9e   : > { %p2228_p7 = pnand %p2226_p5, %p2579_p8  ;;  %p2235_p11 = por %p2234_p10, %p2233_p4 }
  0xa0   : > { %p2229_p9 = pneg %p2228_p7 }
  0xa2   : > { %p2236_p12 = pnand %p2235_p11, %p2229_p9 }
  0xa4   : > { %2239 = shalt.err (!%p2236_p12)
}
  0xa5   : > { %1963 = dma.hbm_to_vmem [thread:$0]  (!%p2563_p6), %s3021_s8, 2048, %s385_s21, [#allocation12], %s2453_s22, %s2453_s22, %s2454_s7  }
  0xa6   : > { %s2457_s3 = smov [#allocation14]   ;;  %s2240_s15 = scalar_lea.hbm %s2991_s9, 2048 }
  0xa7   : > { %s397_s10 = sshll.u32 %s2457_s3, 4  ;;  %p2241_p1 = scmp.ne.s32.totalorder %s2991_s9, %s2240_s15  ;;  %s398_s10 = int_to_ptr.vmem [resolvable:$true] %s397_s10 }
  0xa8   : > { %p2247_p0 = scmp.lt.u32.totalorder %s2240_s15, %s2991_s9 }
  0xa9   : > { %p2243_p3 = pnand %p2241_p1, %p2579_p8 }
  0xab   : > { %p2244_p13 = pneg %p2243_p3 }
  0xad   : > { %p2249_p2 = pnand %p2247_p0, %p2244_p13 }
  0xaf   : > { %2252 = shalt.err (!%p2249_p2)
}
  0xb0   : > { %s2253_s22 = scalar_lea.vmem %s398_s10, 2048  ;;  %p2261_p4 = scmp.lt.s32.totalorder %s398_s10, %s398_s10 }
  0xb1   : > { %p2254_p5 = scmp.ne.s32.totalorder %s398_s10, %s2253_s22  ;;  %p2262_p10 = scmp.lt.s32.totalorder %s2253_s22, %s2253_s22 }
  0xb3   : > { %p2256_p7 = pnand %p2254_p5, %p2579_p8  ;;  %p2263_p11 = por %p2262_p10, %p2261_p4 }
  0xb5   : > { %p2257_p9 = pneg %p2256_p7 }
  0xb7   : > { %p2264_p12 = pnand %p2263_p11, %p2257_p9 }
  0xb9   : > { %2267 = shalt.err (!%p2264_p12)
}
  0xba   : > { %1966 = dma.hbm_to_vmem [thread:$0]  (!%p2563_p6), %s2991_s9, 2048, %s398_s10, [#allocation15], %s3020_s12, %s3020_s12, %s3019_s30  }
  0xbb   : > { %s1591_s27 = sadd.s32 4294967294, %s2446_s20   ;;  %s2720_s16 = sadd.s32 1, %s2446_s20  }
  0xbc   : > { %s41_s14 = ssub.s32 %s2446_s20, %s2720_s16  ;;  %s44_s2 = sadd.s32 1, %s2442_s19 }
  0xbd   : > { %p42_p8 = scmp.eq.s32.totalorder %s41_s14, 0  ;;  %p51_p1 = scmp.ne.s32.totalorder %s2442_s19, %s2438_s18 }
  0xbe   : > { %p52_p3 = scmp.eq.s32.totalorder %s2446_s20, 0  ;;  %p57_p13 = scmp.ne.s32.totalorder %s2438_s18, %s2434_s17 }
  0xbf   : > { %s2731_s3 = scalar_select %p42_p8, %s2442_s19, %s44_s2  }
  0xc0   : > { %p2733_p0 = por %p52_p3, %p51_p1  ;;  %p3023_p2 = scmp.eq.s32.totalorder %s2547_s23, 0 }
  0xc1   : > { %p275_p5 = scmp.eq.s32.totalorder %s2547_s23, 1  ;;  %p281_p7 = scmp.eq.s32.totalorder %s1591_s27, 1 }
  0xc2   : > { %p2739_p6 = por %p3023_p2, %p57_p13  ;;  %p1987_p9 = scmp.lt.s32.totalorder %s2446_s20, 2 }
  0xc3   : > { %s411_s12 = sand.u32 1, %s2442_s19   ;;  %p2746_p4 = por %p275_p5, %p51_p1 }
  0xc4   : > { %s3024_s30 = scalar_select %p2739_p6, 1, 0 }
  0xc5   : > { %s3025_s10 = scalar_select %p2746_p4, 1, 0 }
  0xc6   : > { %p2750_p10 = por %p281_p7, %p57_p13  ;;  %s2754_s15 = sshll.u32 %s411_s12, 2 }
  0xc7   : > { %s1601_s25 = sshll.u32 %s2446_s20, 6  ;;  %s415_s22 = scalar_lea.vmem [#allocation2], %s2754_s15 }
  0xc8   : > { %s3026_s13 = scalar_select %p2750_p10, 1, 0 }
  0xc9   : > { %s2760_s29 = scalar_lea.hbm %s2982_s0, %s1601_s25  ;;  %s422_s7 = sshll.u32 %s415_s22, 4  ;;  %s2763_s7 = int_to_ptr.vmem [resolvable:$true] %s422_s7 }
  0xca   : > { %p2767_p11 = pnand %p1987_p9, %p2733_p0  ;;  %s2774_s2 = scalar_lea.hbm %s2983_s1, %s1601_s25 }
  0xcb   : > { %s429_s28 = sand.u32 1, %s2446_s20   ;;  %s412_s26 = scalar_lea.sflag [#allocation3], %s411_s12 }
  0xcc   : > { %s2268_s4 = scalar_lea.hbm %s2760_s29, 64  ;;  %p2270_p8 = pneg %p2767_p11 }
  0xcd   : > { %p2269_p12 = scmp.ne.s32.totalorder %s2760_s29, %s2268_s4  ;;  %s2273_s5 = scalar_lea.hbm %s2982_s0, 128 }
  0xce   : > { %p2274_p13 = scmp.lt.u32.totalorder %s2760_s29, %s2982_s0  ;;  %p2275_p0 = scmp.lt.u32.totalorder %s2273_s5, %s2268_s4 }
  0xcf   : > { %p2271_p1 = pnand %p2270_p8, %p2269_p12  ;;  %p2277_p5 = scmp.lt.u32.totalorder %s2268_s4, %s2760_s29 }
  0xd0   : > { %p2276_p2 = por %p2275_p0, %p2274_p13 }
  0xd1   : > { %p2272_p3 = pneg %p2271_p1 }
  0xd2   : > { %p2278_p7 = por %p2277_p5, %p2276_p2 }
  0xd4   : > { %p2279_p9 = pnand %p2278_p7, %p2272_p3 }
  0xd6   : > { %2282 = shalt.err (!%p2279_p9)
}
  0xd7   : > { %s2283_s12 = scalar_lea.vmem %s2763_s7, 64  ;;  %s2458_s25 = smov [#allocation2]  }
  0xd8   : > { %p2284_p12 = scmp.ne.s32.totalorder %s2763_s7, %s2283_s12  ;;  %s2288_s14 = sshll.u32 %s2458_s25, 4  ;;  %s2289_s14 = int_to_ptr.vmem [resolvable:$false] %s2288_s14 }
  0xd9   : > { %s2290_s8 = scalar_lea.vmem %s2289_s14, 128  ;;  %p2291_p4 = scmp.lt.s32.totalorder %s2763_s7, %s2289_s14 }
  0xda   : > { %p2286_p1 = pnand %p2284_p12, %p2270_p8  ;;  %p2292_p13 = scmp.lt.s32.totalorder %s2290_s8, %s2283_s12 }
  0xdc   : > { %p2287_p10 = pneg %p2286_p1  ;;  %p2293_p0 = por %p2292_p13, %p2291_p4 }
  0xde   : > { %p2294_p2 = pnand %p2293_p0, %p2287_p10 }
  0xe0   : > { %2297 = shalt.err (!%p2294_p2)
}
  0xe1   : > { %1970 = dma.hbm_to_vmem [thread:$0]  (!%p2767_p11), %s2760_s29, 64, %s2763_s7, %s412_s26  }
  0xe2   : > { %s433_s4 = scalar_lea.vmem [#allocation5], %s2754_s15  ;;  %s430_s11 = scalar_lea.sflag [#allocation6], %s429_s28 }
  0xe3   : > { %s440_s5 = sshll.u32 %s433_s4, 4  ;;  %s2298_s22 = scalar_lea.hbm %s2774_s2, 64  ;;  %s441_s5 = int_to_ptr.vmem [resolvable:$true] %s440_s5 }
  0xe4   : > { %p2299_p4 = scmp.ne.s32.totalorder %s2774_s2, %s2298_s22  ;;  %s2303_s25 = scalar_lea.hbm %s2983_s1, 128 }
  0xe5   : > { %p2304_p5 = scmp.lt.u32.totalorder %s2774_s2, %s2983_s1  ;;  %p2305_p7 = scmp.lt.u32.totalorder %s2303_s25, %s2298_s22 }
  0xe6   : > { %p2301_p10 = pnand %p2299_p4, %p2270_p8  ;;  %p2307_p12 = scmp.lt.u32.totalorder %s2298_s22, %s2774_s2 }
  0xe7   : > { %p2306_p9 = por %p2305_p7, %p2304_p5 }
  0xe8   : > { %p2302_p3 = pneg %p2301_p10 }
  0xe9   : > { %p2308_p1 = por %p2307_p12, %p2306_p9 }
  0xeb   : > { %p2309_p13 = pnand %p2308_p1, %p2302_p3 }
  0xed   : > { %2312 = shalt.err (!%p2309_p13)
}
  0xee   : > { %s2313_s15 = scalar_lea.vmem %s441_s5, 64  ;;  %s2459_s29 = smov [#allocation5]  }
  0xef   : > { %p2314_p0 = scmp.ne.s32.totalorder %s441_s5, %s2313_s15  ;;  %s2318_s7 = sshll.u32 %s2459_s29, 4  ;;  %s2319_s7 = int_to_ptr.vmem [resolvable:$false] %s2318_s7 }
  0xf0   : > { %s2320_s28 = scalar_lea.vmem %s2319_s7, 128  ;;  %p2321_p10 = scmp.lt.s32.totalorder %s441_s5, %s2319_s7 }
  0xf1   : > { %p2316_p2 = pnand %p2314_p0, %p2270_p8  ;;  %p2322_p6 = scmp.lt.s32.totalorder %s2320_s28, %s2313_s15 }
  0xf3   : > { %p2317_p4 = pneg %p2316_p2  ;;  %p2323_p5 = por %p2322_p6, %p2321_p10 }
  0xf5   : > { %p2324_p7 = pnand %p2323_p5, %p2317_p4 }
  0xf7   : > { %2327 = shalt.err (!%p2324_p7)
}
  0xf8   : > { %1973 = dma.hbm_to_vmem [thread:$0]  (!%p2767_p11), %s2774_s2, 64, %s441_s5, %s430_s11  }
  0xf9   : > { %p3028_p3 = scmp.ne.s32.totalorder %s3012_s24, 0 }
  0xfa   : > { %s2827_s26 = sand.u32 (!%p3028_p3), 1, %s2438_s18   ;;  %p3029_p8 = scmp.ne.s32.totalorder (!%p3028_p3), %s3024_s30, 0 }
  0xfb   : > { %449 = sbr.rel (%p3028_p3) target bundleno = 2351 (0x92f), region = 60  ;;  %s1605_s4 = sshll.u32 (!%p3028_p3), %s2827_s26, 2 }
  0xfc   : > { %s452_s22 = scalar_lea.sflag (!%p3028_p3), [#allocation3], %s2827_s26  ;;  %s455_s27 = scalar_lea.vmem (!%p3028_p3), [#allocation2], %s1605_s4 }
 0x102   : > { %2401 = dma.done.wait (%p3029_p8), %s452_s22, 64  }
 0x103   : > { %2403 = vsyncadd (%p3029_p8), %s452_s22, 4294967232  ;;  %s460_s21 = sand.u32 1, %s2547_s23   ;;  %s2836_s24 = scalar_lea.vmem [#allocation5], %s1605_s4 }
 0x104   : > { %s461_s2 = scalar_lea.sflag [#allocation6], %s460_s21 }
 0x105   : > { %2405 = dma.done.wait (%p3029_p8), %s461_s2, 64  }
 0x106   : > { %2407 = vsyncadd (%p3029_p8), %s461_s2, 4294967232  ;;  %p3030_p6 = scmp.eq.s32.totalorder %s2547_s23, 0 }
 0x108   : > { %2409 = dma.done.wait (%p3030_p6), [#allocation6], 128   ;;  %p3031_p11 = pmov %p3030_p6 }
 0x109   : > { %p3032_p9 = pmov %p3030_p6 }
 0x10a   : > { %2411 = vsyncadd (%p3031_p11), [#allocation6], 4294967168 }
 0x10b   : > { %2413 = dma.done.wait (%p3032_p9), [#allocation9], 1536   ;;  %p3033_p12 = pmov %p3030_p6 }
 0x10c   : > { %p3034_p1 = pmov %p3030_p6 }
 0x10d   : > { %2415 = vsyncadd (%p3033_p12), [#allocation9], 4294965760 }
 0x10e   : > { %2417 = dma.done.wait (%p3034_p1), [#allocation12], 4096   ;;  %p3035_p13 = pmov %p3034_p1 }
 0x10f   : > { %p3036_p0 = pmov %p3034_p1 }
 0x110   : > { %2419 = vsyncadd (%p3035_p13), [#allocation12], 4294963200 }
 0x111   : > { %2421 = dma.done.wait (%p3036_p0), [#allocation15], 2048   ;;  %p3037_p2 = pmov %p3036_p0 }
 0x112   : > { %v2460_v0 = vmov 0.0   ;;  %vm2461_vm0 = vmmov 0   ;;  %v2041_v1 = vld [vmem:[#allocation7] sm:$0xff]   ;;  %vm547_vm1 = vcmask 130048   ;;  %v538_v2 = vld [vmem:[%s455_s27] sm:$0xf] }
 0x113   : > { %2423 = vsyncadd (%p3037_p2), [#allocation15], 4294965248  ;;  %1748 = vmatprep.subr.bf16.mxu0 %v2460_v0  ;;  %1750 = vmatprep.mubr.msk.bf16.mxu0 %vm2461_vm0, %v2460_v0  ;;  %v549_v3 = vsel %vm547_vm1, %v538_v2, 0  ;;  %v2042_v9 = vld [vmem:[#allocation8] sm:$0xff]   ;;  %v2043_v10 = vld [vmem:[#allocation8 + $0x8] sm:$0xff]   ;;  %vm682_vm2 = vcmask 523264  }
 0x114   : > { %1772 = vmatprep.subr.bf16.mxu1 %v2460_v0  ;;  %1774 = vmatprep.mubr.msk.bf16.mxu1 %vm2461_vm0, %v2460_v0  ;;  %v2044_v11 = vld [vmem:[#allocation8 + $0x10] sm:$0xff]   ;;  %v2045_v12 = vld [vmem:[#allocation8 + $0x18] sm:$0xff]   ;;  %vm635_vm3 = vcmask 64512   ;;  %vm731_vm4 = vcmask 1043456   ;;  %s1613_s30 = sshll.u32 %s2827_s26, 3  ;;  %v2046_v33 = vld [vmem:[#allocation10] sm:$0xff]  }
 0x115   : > { %1749 = vmatpush3.bf16.msra.mxu0 %v2041_v1  ;;  %v649_v13 = vld [vmem:[%s2836_s24] sm:$0xf]  ;;  %s2883_s5 = scalar_lea.vmem [#allocation17], %s1613_s30  ;;  %v2047_v36 = vld [vmem:[#allocation10 + $0x8] sm:$0xff]   ;;  %v2049_v38 = vld [vmem:[#allocation10 + $0x18] sm:$0xff]   ;;  %v2462_v46 = vmov 0.0|0.0  }
 0x116   : > { %1754 = vmatprep.subr.bf16.mxu0 %v2460_v0  ;;  %v2048_v37 = vld [vmem:[#allocation10 + $0x10] sm:$0xff]   ;;  %v2050_v39 = vld [vmem:[#allocation10 + $0x20] sm:$0xff]   ;;  %v2051_v40 = vld [vmem:[#allocation10 + $0x28] sm:$0xff]   ;;  %s3038_s8 = sld [smem:[#allocation31_spill]]  ;;  %s1668_s15 = sshll.u32 %s2547_s23, 7 }
 0x117   : > { %v2052_v41 = vld [vmem:[#allocation10 + $0x30] sm:$0xff]   ;;  %v2053_v42 = vld [vmem:[#allocation10 + $0x38] sm:$0xff]   ;;  %v883_v43 = vld [vmem:[#allocation11] sm:$0xff]  ;;  %s3039_s28 = sld [smem:[#allocation34_spill]]  ;;  %s1409_s22 = sshll.u32 %s2883_s5, 4  ;;  %s1410_s22 = int_to_ptr.vmem [resolvable:$true] %s1409_s22 }
 0x118   : > { %1751 = vmatmul.mubr.msk.bf16.vlgmr.msra.gmra.mrb[0].mxu0 %vm547_vm1, %v538_v2  ;;  %v884_v44 = vld [vmem:[#allocation11 + $0x8] sm:$0xff]  ;;  %v885_v45 = vld [vmem:[#allocation11 + $0x10] sm:$0xff]  ;;  %v886_v48 = vld [vmem:[#allocation11 + $0x18] sm:$0xff]  ;;  %s1383_s27 = scalar_lea.sflag [#allocation18], %s2827_s26  ;;  %s2328_s21 = scalar_lea.vmem %s1410_s22, 128 }
 0x119   : > { %1756 = vmatprep.mubr.msk.bf16.mxu0 %vm2461_vm0, %v2460_v0  ;;  %v1869_v47 = vpack.c.bf16 %v884_v44, %v883_v43  ;;  %v1872_v49 = vpack.c.bf16 %v886_v48, %v885_v45  ;;  %v887_v50 = vld [vmem:[#allocation11 + $0x20] sm:$0xff]  ;;  %v888_v51 = vld [vmem:[#allocation11 + $0x28] sm:$0xff]  ;;  %v889_v53 = vld [vmem:[#allocation11 + $0x30] sm:$0xff]  ;;  %p2329_p4 = scmp.ne.s32.totalorder %s1410_s22, %s2328_s21  ;;  %p3040_p10 = scmp.ne.s32.totalorder %s3025_s10, 0 }
 0x11a   : > { %v1875_v52 = vpack.c.bf16 %v888_v51, %v887_v50  ;;  %v890_v54 = vld [vmem:[#allocation11 + $0x38] sm:$0xff]  ;;  %v891_v56 = vld [vmem:[#allocation11 + $0x40] sm:$0xff]  ;;  %v892_v57 = vld [vmem:[#allocation11 + $0x48] sm:$0xff]  ;;  %s2464_s2 = smov [#allocation17]  }
 0x11b   : > { %v1878_v55 = vpack.c.bf16 %v890_v54, %v889_v53  ;;  %v1881_v58 = vpack.c.bf16 %v892_v57, %v891_v56  ;;  %v893_v59 = vld [vmem:[#allocation11 + $0x50] sm:$0xff]  ;;  %v894_v60 = vld [vmem:[#allocation11 + $0x58] sm:$0xff]  ;;  %v895_v62 = vld [vmem:[#allocation11 + $0x60] sm:$0xff]  ;;  %p2330_p5 = pnand %p2329_p4, %p3040_p10  ;;  %s2332_s24 = sshll.u32 %s2464_s2, 4  ;;  %s2333_s24 = int_to_ptr.vmem [resolvable:$false] %s2332_s24 }
 0x11c   : > { %v1884_v61 = vpack.c.bf16 %v894_v60, %v893_v59  ;;  %v896_v63 = vld [vmem:[#allocation11 + $0x68] sm:$0xff]  ;;  %v2085_v43 = vld [vmem:[#allocation14 + $0x18] sm:$0xff]   ;;  %v2086_v44 = vld [vmem:[#allocation14 + $0x60] sm:$0xff]   ;;  %s2334_s11 = scalar_lea.vmem %s2333_s24, 256  ;;  %p2335_p3 = scmp.lt.s32.totalorder %s1410_s22, %s2333_s24 }
 0x11d   : > { %v1887_v1 = vpack.c.bf16 %v896_v63, %v895_v62  ;;  %v2087_v45 = vld [vmem:[#allocation14 + $0x20] sm:$0xff]   ;;  %v1633_v54 = vld [vmem:[%s3038_s8] ss:$0 sm:$0xff]  ;;  %v2091_v59 = vld [vmem:[#allocation14 + $0x30] sm:$0xff]   ;;  %s2910_s4 = scalar_lea.hbm %s3039_s28, %s1668_s15  ;;  %p2331_p7 = pneg %p2330_p5 }
 0x11e   : > { %1755 = vmatpush3.bf16.xpose.msra.mxu0 %v549_v3  ;;  %v2092_v60 = vld [vmem:[#allocation14 + $0x78] sm:$0xff]   ;;  %p2336_p8 = scmp.lt.s32.totalorder %s2334_s11, %s2328_s21 }
 0x11f   : > { %1760 = vmatprep.subr.bf16.mxu0 %v2460_v0 }
 0x120   : > { %p2337_p6 = por %p2336_p8, %p2335_p3 }
 0x122   : > { %p2338_p11 = pnand %p2337_p6, %p2331_p7 }
 0x1eb   : > { %v585_v4 = vpop.f32.mrb[0].mxu0 }
 0x1ec   : > { %v591_v5 = vpack.c.bf16 %v585_v4, %v585_v4  ;;  %v1752_v6 = vpop.f32.mrb[1].mxu0 }
 0x1ed   : > { %v588_v7 = vpop.f32.mrb[2].mxu0 }
 0x1ee   : > { %v1753_v8 = vpop.f32.mrb[3].mxu0  ;;  %1757 = vmatmul.mubr.msk.bf16.vlgmr.msra.gmra.mrb[4].mxu0 %vm547_vm1, %v591_v5  ;;  %v897_v7 = vld [vmem:[#allocation11 + $0x70] sm:$0xff] }
 0x1ef   : > { %1768 = vmatprep.mubr.msk.bf16.mxu0 %vm2461_vm0, %v2460_v0  ;;  %1761 = vmatpush3.bf16.msra.mxu0 %v2042_v9  ;;  %v898_v8 = vld [vmem:[#allocation11 + $0x78] sm:$0xff] }
 0x1f0   : > { %1762 = vmatprep.subr.bf16.mxu0 %v2460_v0  ;;  %v1890_v9 = vpack.c.bf16 %v898_v8, %v897_v7 }
 0x1f3   : > { %1763 = vmatpush3.bf16.msra.mxu0 %v2043_v10 }
 0x1f4   : > { %1764 = vmatprep.subr.bf16.mxu0 %v2460_v0 }
 0x1f7   : > { %1765 = vmatpush3.bf16.msra.mxu0 %v2044_v11 }
 0x1f8   : > { %1766 = vmatprep.subr.bf16.mxu0 %v2460_v0 }
 0x1fb   : > { %1767 = vmatpush3.bf16.msra.mxu0 %v2045_v12 }
 0x1fc   : > { %1868 = vmatprep.subr.bf16.mxu0 %v2462_v46 }
 0x1fe   : > { %1769 = vmatmul.mubr.msk.bf16.vlgmr.msra.gmra.mrb[8].mxu0 %vm682_vm2, %v649_v13 }
 0x1ff   : > { %1830 = vmatprep.mubr.msk.f32.mxu0 %vm2461_vm0, %v2460_v0  ;;  %1870 = vmatpush3.bf16.msra.mxu0 %v1869_v47 }
 0x200   : > { %1871 = vmatprep.subr.bf16.mxu0 %v2462_v46 }
 0x203   : > { %1873 = vmatpush3.bf16.msra.mxu0 %v1872_v49 }
 0x204   : > { %1874 = vmatprep.subr.bf16.mxu0 %v2462_v46 }
 0x207   : > { %1876 = vmatpush3.bf16.msra.mxu0 %v1875_v52 }
 0x208   : > { %1877 = vmatprep.subr.bf16.mxu0 %v2462_v46 }
 0x20b   : > { %1879 = vmatpush3.bf16.msra.mxu0 %v1878_v55 }
 0x20c   : > { %1880 = vmatprep.subr.bf16.mxu0 %v2462_v46 }
 0x20f   : > { %1882 = vmatpush3.bf16.msra.mxu0 %v1881_v58 }
 0x210   : > { %1883 = vmatprep.subr.bf16.mxu0 %v2462_v46 }
 0x213   : > { %1885 = vmatpush3.bf16.msra.mxu0 %v1884_v61 }
 0x214   : > { %1886 = vmatprep.subr.bf16.mxu0 %v2462_v46 }
 0x217   : > { %1888 = vmatpush3.bf16.msra.mxu0 %v1887_v1 }
 0x218   : > { %1889 = vmatprep.subr.bf16.mxu0 %v2462_v46 }
 0x21b   : > { %1891 = vmatpush3.bf16.msra.mxu0 %v1890_v9 }
 0x2c1   : > { %v629_v14 = vpop.f32.mrb[4].mxu0 }
 0x2c2   : > { %v1758_v15 = vpop.f32.mrb[5].mxu0  ;;  %v636_v16 = vsel %vm635_vm3, %v629_v14, -inf }
 0x2c3   : > { %637 = vmax.xlane.f32.xlu0 %v636_v16  ;;  %v632_v17 = vpop.f32.mrb[6].mxu0  ;;  %v2054_v15 = vld [vmem:[#allocation13] ss:$8 sps:$4 sm:$0xff]   ;;  %v2056_v16 = vld [vmem:[#allocation13 + $0x4] ss:$8 sps:$4 sm:$0xff]  }
 0x2c4   : > { %v1759_v18 = vpop.f32.mrb[7].mxu0  ;;  %v2059_v17 = vld [vmem:[#allocation13 + $0x14] ss:$8 sps:$4 sm:$0xff]   ;;  %1156 = vmatprep.subr.bf16.mxu0 %v2056_v16 }
 0x2c5   : > { %v2057_v18 = vld [vmem:[#allocation13 + $0x10] ss:$8 sps:$4 sm:$0xff]  }
 0x2d1   : > { %v720_v24 = vpop.f32.mrb[8].mxu0 }
 0x2d2   : > { %v727_v25 = vpack.c.bf16 %v720_v24, %v720_v24  ;;  %v1770_v26 = vpop.f32.mrb[9].mxu0 }
 0x2d3   : > { %v723_v27 = vpop.f32.mrb[10].mxu0  ;;  %v2063_v26 = vld [vmem:[#allocation13 + $0x30] ss:$8 sps:$4 sm:$0xff]  }
 0x2d4   : > { %v1771_v28 = vpop.f32.mrb[11].mxu0  ;;  %v733_v29 = vsel %vm731_vm4, %v727_v25, 0  ;;  %v2065_v25 = vld [vmem:[#allocation13 + $0x34] ss:$8 sps:$4 sm:$0xff]   ;;  %v2066_v27 = vld [vmem:[#allocation13 + $0x40] ss:$8 sps:$4 sm:$0xff]  }
 0x2d5   : > { %1773 = vmatpush3.bf16.msra.mxu1 %v733_v29  ;;  %v2068_v28 = vld [vmem:[#allocation13 + $0x44] ss:$8 sps:$4 sm:$0xff]   ;;  %v2071_v29 = vld [vmem:[#allocation13 + $0x54] ss:$8 sps:$4 sm:$0xff]  }
 0x2d6   : > { %1778 = vmatprep.subr.bf16.mxu1 %v2460_v0 }
 0x350   : > { %v638_v19 = vpop.xlane.xlu0 %637 }
 0x351   : > { %v639_v20 = vsub.f32 %v629_v14, %v638_v19  ;;  %v2062_v19 = vld [vmem:[#allocation13 + $0x24] ss:$8 sps:$4 sm:$0xff]  }
 0x353   : > { %v640_v21 = vmul.f32 1.442695, %v639_v20  ;;  %v2060_v20 = vld [vmem:[#allocation13 + $0x20] ss:$8 sps:$4 sm:$0xff]  }
 0x355   : > { %2094 = vpow2.f32 %v640_v21 }
 0x35f   : > { %v2095_v22 = vpop.eup %2094 }
 0x360   : > { %v642_v23 = vsel %vm635_vm3, %v2095_v22, 0.0 }
 0x361   : > { %643 = vadd.xlane.f32.xlu0 %v642_v23 }
 0x3ee   : > { %v644_v30 = vpop.xlane.xlu0 %643 }
 0x3ef   : > { %2096 = vrcp.f32 %v644_v30  ;;  %v2463_v30 = vmov 0  }
 0x3f9   : > { %v2097_v31 = vpop.eup %2096 }
 0x3fa   : > { %v646_v32 = vmul.f32 %v2097_v31, %v2095_v22  ;;  %v2069_v31 = vld [vmem:[#allocation13 + $0x50] ss:$8 sps:$4 sm:$0xff]  }
 0x3fc   : > { %v726_v34 = vpack.c.bf16 %v646_v32, %v646_v32  ;;  %v647_v35 = vsel %vm635_vm3, %v646_v32, 0.0  ;;  %v2074_v32 = vld [vmem:[#allocation13 + $0x64] ss:$8 sps:$4 sm:$0xff]  }
 0x3fd   : > { %648 = vst [vmem:[%s2883_s5] sm:$0xff] %v647_v35  ;;  %v2075_v35 = vld [vmem:[#allocation13 + $0x70] ss:$8 sps:$4 sm:$0xff]  }
 0x3fe   : > { %1775 = vmatmul.mubr.msk.bf16.vlgmr.msra.gmra.mrb[0].mxu1 %vm635_vm3, %v726_v34  ;;  %v2077_v34 = vld [vmem:[#allocation13 + $0x74] ss:$8 sps:$4 sm:$0xff]  }
 0x3ff   : > { %1779 = vmatpush3.bf16.msra.mxu1 %v2046_v33  ;;  %1794 = vmatprep.mubr.msk.bf16.mxu1 %vm2461_vm0, %v2460_v0  ;;  %v2072_v33 = vld [vmem:[#allocation13 + $0x60] ss:$8 sps:$4 sm:$0xff]  }
 0x400   : > { %1780 = vmatprep.subr.bf16.mxu1 %v2460_v0 }
 0x403   : > { %1781 = vmatpush3.bf16.msra.mxu1 %v2047_v36  ;;  %v2078_v36 = vld [vmem:[#allocation14 + $0x40] sm:$0xff]  }
 0x404   : > { %1782 = vmatprep.subr.bf16.mxu1 %v2460_v0 }
 0x407   : > { %1783 = vmatpush3.bf16.msra.mxu1 %v2048_v37  ;;  %v2079_v37 = vld [vmem:[#allocation14] sm:$0xff]  }
 0x408   : > { %1784 = vmatprep.subr.bf16.mxu1 %v2460_v0 }
 0x40b   : > { %1785 = vmatpush3.bf16.msra.mxu1 %v2049_v38  ;;  %v2080_v38 = vld [vmem:[#allocation14 + $0x48] sm:$0xff]  }
 0x40c   : > { %1786 = vmatprep.subr.bf16.mxu1 %v2460_v0 }
 0x40f   : > { %1787 = vmatpush3.bf16.msra.mxu1 %v2050_v39  ;;  %v2081_v39 = vld [vmem:[#allocation14 + $0x8] sm:$0xff]  }
 0x410   : > { %1788 = vmatprep.subr.bf16.mxu1 %v2460_v0 }
 0x413   : > { %1789 = vmatpush3.bf16.msra.mxu1 %v2051_v40  ;;  %v2082_v40 = vld [vmem:[#allocation14 + $0x50] sm:$0xff]  }
 0x414   : > { %1790 = vmatprep.subr.bf16.mxu1 %v2460_v0 }
 0x417   : > { %1791 = vmatpush3.bf16.msra.mxu1 %v2052_v41  ;;  %v2083_v41 = vld [vmem:[#allocation14 + $0x10] sm:$0xff]  }
 0x418   : > { %1792 = vmatprep.subr.bf16.mxu1 %v2460_v0 }
 0x41b   : > { %1793 = vmatpush3.bf16.msra.mxu1 %v2053_v42  ;;  %v2084_v42 = vld [vmem:[#allocation14 + $0x58] sm:$0xff]  }
 0x41c   : > { %1892 = vmatprep.subr.bf16.mxu1 %v2462_v46 }
 0x4d1   : > { %v769_v2 = vpop.f32.mrb[0].mxu1 }
 0x4d2   : > { %v775_v3 = vpack.c.bf16 %v769_v2, %v769_v2  ;;  %v1776_v4 = vpop.f32.mrb[1].mxu1 }
 0x4d3   : > { %v772_v5 = vpop.f32.mrb[2].mxu1 }
 0x4d4   : > { %v1777_v6 = vpop.f32.mrb[3].mxu1  ;;  %1795 = vmatmul.mubr.bf16.vlgmr.msra.gmra.mrb[4].mxu1 %v775_v3 }
 0x4d5   : > { %1894 = vmatpush3.bf16.msra.mxu1 %v1869_v47  ;;  %1865 = vmatprep.mubr.msk.f32.mxu1 %vm2461_vm0, %v2460_v0  ;;  %v2089_v47 = vld [vmem:[#allocation14 + $0x28] sm:$0xff]  }
 0x4d6   : > { %1895 = vmatprep.subr.bf16.mxu1 %v2462_v46 }
 0x4d9   : > { %1897 = vmatpush3.bf16.msra.mxu1 %v1872_v49 }
 0x4da   : > { %1898 = vmatprep.subr.bf16.mxu1 %v2462_v46 }
 0x4dd   : > { %1900 = vmatpush3.bf16.msra.mxu1 %v1875_v52  ;;  %v1632_v52 = vld [vmem:[%s2988_s6] ss:$0 sm:$0xff] }
 0x4de   : > { %1901 = vmatprep.subr.bf16.mxu1 %v2462_v46 }
 0x4e1   : > { %1903 = vmatpush3.bf16.msra.mxu1 %v1878_v55 }
 0x4e2   : > { %1904 = vmatprep.subr.bf16.mxu1 %v2462_v46 }
 0x4e5   : > { %1906 = vmatpush3.bf16.msra.mxu1 %v1881_v58  ;;  %v2090_v58 = vld [vmem:[#allocation14 + $0x70] sm:$0xff]  }
 0x4e6   : > { %1907 = vmatprep.subr.bf16.mxu1 %v2462_v46 }
 0x4e9   : > { %1909 = vmatpush3.bf16.msra.mxu1 %v1884_v61  ;;  %v2093_v61 = vld [vmem:[#allocation14 + $0x38] sm:$0xff]  }
 0x4ea   : > { %1910 = vmatprep.subr.bf16.mxu1 %v2462_v46 }
 0x4ed   : > { %1912 = vmatpush3.bf16.msra.mxu1 %v1887_v1 }
 0x4ee   : > { %1913 = vmatprep.subr.bf16.mxu1 %v2462_v46  ;;  %v2088_v46 = vld [vmem:[#allocation14 + $0x68] sm:$0xff]  }
 0x4f1   : > { %1915 = vmatpush3.bf16.msra.mxu1 %v1890_v9 }
 0x4f2   : > { %1726 = vmatprep.subr.bf16.mxu1 %v2078_v36 }
 0x5a7   : > { %v874_v10 = vpop.f32.mrb[4].mxu1 }
 0x5a8   : > { %vm880_vm5 = vcmp.ge.f32.partialorder %v874_v10, 0.0  ;;  %v881_v0 = vmul.f32 0.2, %v874_v10  ;;  %v1796_v11 = vpop.f32.mrb[5].mxu1 }
 0x5a9   : > { %v877_v12 = vpop.f32.mrb[6].mxu1 }
 0x5aa   : > { %v1797_v13 = vpop.f32.mrb[7].mxu1  ;;  %v882_v14 = vsel %vm880_vm5, %v874_v10, %v881_v0 }
 0x5ab   : > { %1831 = vmatmul.mubr.f32.vlgmr.msra.gmra.mrb[12].mxu0 %v882_v14 }
 0x5ac   : > { %1157 = vmatpush1.bf16.msra.mxu0 %v2054_v15  ;;  %1188 = vmatprep.mubr.bf16.mxu0 %v2463_v30 }
 0x5ad   : > { %1158 = vmatprep.subr.bf16.mxu0 %v2059_v17 }
 0x5b0   : > { %1159 = vmatpush1.bf16.msra.mxu0 %v2057_v18 }
 0x5b1   : > { %1160 = vmatprep.subr.bf16.mxu0 %v2062_v19 }
 0x5b4   : > { %1161 = vmatpush1.bf16.msra.mxu0 %v2060_v20 }
 0x5b5   : > { %1162 = vmatprep.subr.bf16.mxu0 %v2065_v25 }
 0x5b8   : > { %1163 = vmatpush1.bf16.msra.mxu0 %v2063_v26 }
 0x5b9   : > { %1164 = vmatprep.subr.bf16.mxu0 %v2068_v28 }
 0x5bc   : > { %1165 = vmatpush1.bf16.msra.mxu0 %v2066_v27 }
 0x5bd   : > { %1166 = vmatprep.subr.bf16.mxu0 %v2071_v29 }
 0x5c0   : > { %1167 = vmatpush1.bf16.msra.mxu0 %v2069_v31 }
 0x5c1   : > { %1168 = vmatprep.subr.bf16.mxu0 %v2074_v32 }
 0x5c4   : > { %1169 = vmatpush1.bf16.msra.mxu0 %v2072_v33 }
 0x5c5   : > { %1170 = vmatprep.subr.bf16.mxu0 %v2077_v34 }
 0x5c8   : > { %1171 = vmatpush1.bf16.msra.mxu0 %v2075_v35 }
 0x67e   : > { %v965_v21 = vpop.f32.mrb[12].mxu0 }
 0x67f   : > { %v969_v22 = vsub.f32 %v882_v14, %v965_v21  ;;  %v1832_v23 = vpop.f32.mrb[13].mxu0 }
 0x681   : > { %v970_v24 = vmul.f32 %v969_v22, %v969_v22 }
 0x683   : > { %1866 = vmatmul.mubr.f32.vlgmr.msra.gmra.mrb[8].mxu1 %v970_v24 }
 0x684   : > { %1727 = vmatpush3.bf16.msra.mxu1 %v2079_v37 }
 0x685   : > { %1728 = vmatprep.subr.bf16.mxu1 %v2080_v38 }
 0x688   : > { %1729 = vmatpush3.bf16.msra.mxu1 %v2081_v39 }
 0x689   : > { %1730 = vmatprep.subr.bf16.mxu1 %v2082_v40 }
 0x68c   : > { %1731 = vmatpush3.bf16.msra.mxu1 %v2083_v41 }
 0x68d   : > { %1732 = vmatprep.subr.bf16.mxu1 %v2084_v42 }
 0x690   : > { %1733 = vmatpush3.bf16.msra.mxu1 %v2085_v43 }
 0x691   : > { %1734 = vmatprep.subr.bf16.mxu1 %v2086_v44 }
 0x694   : > { %1735 = vmatpush3.bf16.msra.mxu1 %v2087_v45 }
 0x695   : > { %1736 = vmatprep.subr.bf16.mxu1 %v2088_v46 }
 0x698   : > { %1737 = vmatpush3.bf16.msra.mxu1 %v2089_v47 }
 0x699   : > { %1738 = vmatprep.subr.bf16.mxu1 %v2090_v58 }
 0x69c   : > { %1739 = vmatpush3.bf16.msra.mxu1 %v2091_v59 }
 0x69d   : > { %1740 = vmatprep.subr.bf16.mxu1 %v2092_v60 }
 0x6a0   : > { %1741 = vmatpush3.bf16.msra.mxu1 %v2093_v61 }
 0x756   : > { %v1037_v48 = vpop.f32.mrb[8].mxu1 }
 0x757   : > { %v1038_v49 = vadd.f32 1e-05, %v1037_v48  ;;  %v1867_v50 = vpop.f32.mrb[9].mxu1 }
 0x759   : > { %2098 = vrsqrt.f32 %v1038_v49 }
 0x763   : > { %v2099_v51 = vpop.eup %2098 }
 0x764   : > { %v1042_v53 = vmul.f32 %v2099_v51, %v969_v22 }
 0x766   : > { %v1050_v55 = vmul.f32 %v1632_v52, %v1042_v53 }
 0x768   : > { %v1058_v56 = vadd.f32 %v1633_v54, %v1050_v55 }
 0x76a   : > { %v1059_v57 = vpack.c.bf16 %v1058_v56, %v1058_v56 }
 0x76c   : > { %1189 = vmatmul.mubr.bf16.vlgmr.msra.gmra.mrb[16].mxu0 %v1059_v57 }
 0x83f   : > { %v1190_v62 = vpop.f32.mrb[16].mxu0 }
 0x840   : > { %vm1197_vm6 = vcmp.ge.f32.partialorder %v1190_v62, 0.0  ;;  %v1199_v63 = vmul.f32 0.2, %v1190_v62  ;;  %v1192_v1 = vpop.f32.mrb[17].mxu0 }
 0x841   : > { %vm1198_vm7 = vcmp.ge.f32.partialorder %v1192_v1, 0.0  ;;  %v1200_v2 = vmul.f32 0.2, %v1192_v1  ;;  %v1194_v3 = vpop.f32.mrb[18].mxu0 }
 0x842   : > { %v1201_v4 = vsel %vm1197_vm6, %v1190_v62, %v1199_v63  ;;  %v1195_v5 = vpop.f32.mrb[19].mxu0 }
 0x843   : > { %v1202_v6 = vsel %vm1198_vm7, %v1192_v1, %v1200_v2  ;;  %v1203_v8 = vpack.c.bf16 %v1201_v4, %v1201_v4 }
 0x844   : > { %v1204_v7 = vpack.c.bf16 %v1202_v6, %v1202_v6 }
 0x846   : > { %1365 = vmatprep.mubr.bf16.mxu1 %v1204_v7 }
 0x847   : > { %1366 = vmatmul.mubr.bf16.vlgmr.msra.gmra.mrb[12].mxu1 %v1203_v8 }
 0x848   : > { %2341 = shalt.err (!%p2338_p11)
}
 0x849   : > { %s2342_s5 = scalar_lea.hbm %s2910_s4, 128  ;;  %s2346_s14 = scalar_lea.hbm %s3039_s28, 256 }
 0x84a   : > { %p2343_p9 = scmp.ne.s32.totalorder %s2910_s4, %s2342_s5  ;;  %p2347_p13 = scmp.lt.u32.totalorder %s2910_s4, %s3039_s28 }
 0x84b   : > { %p2348_p0 = scmp.lt.u32.totalorder %s2346_s14, %s2342_s5  ;;  %p2350_p4 = scmp.lt.u32.totalorder %s2342_s5, %s2910_s4 }
 0x84c   : > { %p2344_p12 = pnand %p2343_p9, %p3040_p10 }
 0x84d   : > { %p2349_p2 = por %p2348_p0, %p2347_p13 }
 0x84e   : > { %p2345_p1 = pneg %p2344_p12 }
 0x84f   : > { %p2351_p5 = por %p2350_p4, %p2349_p2 }
 0x851   : > { %p2352_p7 = pnand %p2351_p5, %p2345_p1 }
 0x853   : > { %2355 = shalt.err (!%p2352_p7)
}
 0x854   : > { %1945 = dma.vmem_to_hbm [thread:$0]  (%p3040_p10), %s1410_s22, 128, %s2910_s4, %s1383_s27  }
 0x855   : > { %s529_s7 = scalar_lea.vmem [#allocation16], %s1613_s30  ;;  %s3041_s11 = sld [smem:[#allocation33_spill]] }
 0x856   : > { %s1396_s21 = sshll.u32 %s529_s7, 4  ;;  %s1378_s4 = scalar_lea.sflag [#allocation4], %s2827_s26  ;;  %s2940_s21 = int_to_ptr.vmem [resolvable:$true] %s1396_s21 }
 0x857   : > { %s2356_s22 = scalar_lea.vmem %s2940_s21, 128  ;;  %s2465_s30 = smov [#allocation16]  }
 0x858   : > { %p2357_p3 = scmp.ne.s32.totalorder %s2940_s21, %s2356_s22  ;;  %s2360_s23 = sshll.u32 %s2465_s30, 4  ;;  %s2361_s23 = int_to_ptr.vmem [resolvable:$false] %s2360_s23 }
 0x859   : > { %s2362_s27 = scalar_lea.vmem %s2361_s23, 256  ;;  %p2363_p11 = scmp.lt.s32.totalorder %s2940_s21, %s2361_s23 }
 0x85a   : > { %p2358_p8 = pnand %p2357_p3, %p3040_p10  ;;  %p2364_p9 = scmp.lt.s32.totalorder %s2362_s27, %s2356_s22 }
 0x85b   : > { %s2938_s5 = scalar_lea.hbm %s3041_s11, %s1668_s15 }
 0x85c   : > { %p2359_p6 = pneg %p2358_p8  ;;  %p2365_p12 = por %p2364_p9, %p2363_p11 }
 0x85e   : > { %p2366_p1 = pnand %p2365_p12, %p2359_p6 }
 0x91a   : > { %v1742_v9 = vpop.f32.mrb[12].mxu1 }
 0x91b   : > { %v1743_v10 = vpop.f32.mrb[13].mxu1 }
 0x91c   : > { %v1744_v0 = vadd.f32 %v1743_v10, %v1742_v9  ;;  %v1745_v11 = vpop.f32.mrb[14].mxu1 }
 0x91d   : > { %v1746_v12 = vpop.f32.mrb[15].mxu1 }
 0x91e   : > { %vm1373_vm8 = vcmp.ge.f32.partialorder %v1744_v0, 0.0  ;;  %v1374_v13 = vmul.f32 0.2, %v1744_v0 }
 0x920   : > { %v1375_v14 = vsel %vm1373_vm8, %v1744_v0, %v1374_v13 }
 0x921   : > { %1376 = vst [vmem:[%s529_s7] sm:$0xff] %v1375_v14 }
 0x922   : > { %2369 = shalt.err (!%p2366_p1)
}
 0x923   : > { %s2370_s26 = scalar_lea.hbm %s2938_s5, 128  ;;  %s2374_s25 = scalar_lea.hbm %s3041_s11, 256 }
 0x924   : > { %p2371_p13 = scmp.ne.s32.totalorder %s2938_s5, %s2370_s26  ;;  %p2375_p4 = scmp.lt.u32.totalorder %s2938_s5, %s3041_s11 }
 0x925   : > { %p2376_p5 = scmp.lt.u32.totalorder %s2374_s25, %s2370_s26  ;;  %p2378_p3 = scmp.lt.u32.totalorder %s2370_s26, %s2938_s5 }
 0x926   : > { %p2372_p0 = pnand %p2371_p13, %p3040_p10 }
 0x927   : > { %p2377_p7 = por %p2376_p5, %p2375_p4 }
 0x928   : > { %p2373_p2 = pneg %p2372_p0 }
 0x929   : > { %p2379_p8 = por %p2378_p3, %p2377_p7 }
 0x92b   : > { %p2380_p6 = pnand %p2379_p8, %p2373_p2 }
 0x92d   : > { %2383 = shalt.err (!%p2380_p6)
}
 0x92e   : > { %1944 = dma.vmem_to_hbm [thread:$0]  (%p3040_p10), %s2940_s21, 128, %s2938_s5, %s1378_s4  }
 0x92f PF: > { %s1421_s29 = sand.u32 1, %s2434_s17   ;;  %p3042_p11 = scmp.ne.s32.totalorder %s3026_s13, 0 }
 0x930   : > { %p3043_p9 = scmp.ge.s32.totalorder %s2446_s20, 2  ;;  %s1422_s7 = scalar_lea.sflag [#allocation4], %s1421_s29 }
 0x932   : > { %p1975_p12 = pnand %p3043_p9, %p3042_p11 }
 0x934   : > { %2425 = dma.done.wait (!%p1975_p12), %s1422_s7, 128  }
 0x935   : > { %2427 = vsyncadd (!%p1975_p12), %s1422_s7, 4294967168  ;;  %s1431_s2 = scalar_lea.sflag [#allocation18], %s1421_s29 }
 0x936   : > { %2429 = dma.done.wait (!%p1975_p12), %s1431_s2, 128  }
 0x937   : > { %2431 = vsyncadd (!%p1975_p12), %s1431_s2, 4294967168  ;;  %p34_p10 = scmp.ge.s32.totalorder %s2720_s16, 4   ;;  %s3044_s17 = smov %s2438_s18 }
 0x938   : > { %s3045_s18 = smov %s2442_s19  ;;  %s3046_s19 = smov %s2731_s3 }
 0x939   : > { %s3047_s20 = smov %s2720_s16  ;;  %36 = sbr.rel (!%p34_p10) target bundleno = 21 (0x15), region = 159 }
 0x940   :  { %1436 = vsyncpa [#allocation3], 1 }
 0x941   :  { %1438 = vsyncpa [#allocation3 + $0x1], 1 }
 0x942   :  { %1439 = vsyncpa [#allocation6], 1 }
 0x943   :  { %1441 = vsyncpa [#allocation6 + $0x1], 1 }
 0x944   :  { %1442 = vsyncpa [#allocation9], 1 }
 0x945   :  { %1443 = vsyncpa [#allocation12], 1 }
 0x946   :  { %1444 = vsyncpa [#allocation15], 1 }
 0x947   :  { %1445 = vsyncpa [#allocation4], 1 }
 0x948   :  { %1447 = vsyncpa [#allocation4 + $0x1], 1 }
 0x949   :  { %1448 = vsyncpa [#allocation18], 1 }
 0x94a   :  { %1450 = vsyncpa [#allocation18 + $0x1], 1 }

</bundles_post_ra>
